<compile_context>
chip_gen: v7x
topology: tpu7x:2x2x1
jax: 0.10.0
libtpu: 0.0.40
codegen_flags: <defaults>
</compile_context>

<pallas_src>
import functools

import jax
import jax.numpy as jnp
from jax import lax
from jax.experimental import pallas as pl
from jax.experimental.pallas import tpu as pltpu


def _ntxent_kernel(q_ref, k_ref, out_ref, m_ref, l_ref, pos_ref, *,
                   batch_size, inv_temp, use_cosine):
    qi = pl.program_id(0)
    ki = pl.program_id(1)
    num_k = pl.num_programs(1)
    tq = q_ref.shape[0]
    tk = k_ref.shape[0]
    n2 = 2 * batch_size

    # --- init running stats at the first k tile of every q tile -------------
    @pl.when(ki == 0)
    def _init():
        m_ref[...] = jnp.full(m_ref.shape, -1e30, jnp.float32)
        l_ref[...] = jnp.zeros(l_ref.shape, jnp.float32)
        pos_ref[...] = jnp.zeros(pos_ref.shape, jnp.float32)

    q = q_ref[...]                      # (tq, D), input dtype
    k = k_ref[...]                      # (tk, D), input dtype

    if use_cosine:
        # Normalize the k-tile rows once per tile; keep the MXU in the input
        # dtype.  Fold the q-side inverse norm and 1/T into one post-scale.
        kf = k.astype(jnp.float32)
        k_inv = 1.0 / jnp.maximum(
            jnp.sqrt(jnp.sum(kf * kf, axis=-1, keepdims=True)), 1e-8)
        k_mm = (kf * k_inv).astype(k.dtype)
        qf = q.astype(jnp.float32)
        q_scale = inv_temp / jnp.maximum(
            jnp.sqrt(jnp.sum(qf * qf, axis=-1, keepdims=True)), 1e-8)  # (tq,1)
    else:
        k_mm = k
        q_scale = None

    # (tq, tk) similarity tile on the MXU; contract over D, no transpose.
    sim = lax.dot_general(q, k_mm, (((1,), (1,)), ((), ())),
                          preferred_element_type=jnp.float32)
    if use_cosine:
        sim = sim * q_scale
    else:
        sim = sim * jnp.float32(inv_temp)

    row_l = lax.broadcasted_iota(jnp.int32, (tq, tk), 0)
    col_l = lax.broadcasted_iota(jnp.int32, (tq, tk), 1)

    # --- positive pairs: only one k tile per q tile holds them --------------
    # pair(i) = (i + N) mod 2N.  The wrapper guarantees either tq == 2N (one
    # tile) or tq | N, so the pair columns of this q tile live entirely in
    # k tile (qi + N//tq) % num_k.
    pair_ki = (qi + (batch_size // tq)) % num_k

    @pl.when(ki == pair_ki)
    def _positives():
        row_g = row_l + qi * tq
        col_g = col_l + ki * tk
        pmask = col_g == ((row_g + batch_size) % n2)
        pos_ref[...] += jnp.sum(jnp.where(pmask, sim, 0.0),
                                axis=1, keepdims=True)

    # --- mask self-similarity (diagonal) only in tiles on the diagonal ------
    on_diag = (qi == ki).astype(jnp.float32)
    penalty = jnp.where(row_l == col_l,
                        jnp.float32(-1e30), jnp.float32(0.0)) * on_diag
    masked = sim + penalty

    # --- online (flash-style) logsumexp over k tiles -------------------------
    m_prev = m_ref[...]
    m_new = jnp.maximum(m_prev, jnp.max(masked, axis=-1, keepdims=True))
    alpha = jnp.exp(m_prev - m_new)
    l_ref[...] = alpha * l_ref[...] + jnp.sum(jnp.exp(masked - m_new),
                                              axis=-1, keepdims=True)
    m_ref[...] = m_new

    # --- finalize: per-row loss = logsumexp_{j != i} sim[i,j] - sim[i,pair(i)]
    @pl.when(ki == num_k - 1)
    def _finalize():
        out_ref[...] = m_ref[...] + jnp.log(l_ref[...]) - pos_ref[...]


def _choose_row_tile(batch_size, max_tile):
    """Largest row tile t <= max_tile with t % 8 == 0 and t | N (so the pair
    columns of a q tile land in exactly one k tile); falls back to 2N."""
    n2 = 2 * batch_size
    if n2 <= max_tile or n2 % 8 != 0:
        return n2
    t = (max_tile // 8) * 8
    while t >= 8:
        if batch_size % t == 0:
            return t
        t -= 8
    return n2


def ntxent_loss(zis, zjs, *, temperature=0.5, use_cosine_similarity=True,
                max_row_tile=256):
    """NT-Xent loss.  zis, zjs: (batch, dim).  Returns the scalar mean loss."""
    assert zis.shape == zjs.shape and zis.ndim == 2
    batch_size, dim = zis.shape
    n2 = 2 * batch_size

    # TODO(synk): the concat (+ lane padding) is one extra HBM round trip; it
    # could be removed by routing q/k tiles straight from zis/zjs via index_maps.
    reps = jnp.concatenate([zjs, zis], axis=0)          # (2N, D)
    d_pad = ((dim + 127) // 128) * 128                  # lane-dense feature dim
    if d_pad != dim:
        reps = jnp.pad(reps, ((0, 0), (0, d_pad - dim)))

    t = _choose_row_tile(batch_size, max_row_tile)
    n_q = n2 // t
    n_k = n2 // t

    kernel = functools.partial(
        _ntxent_kernel,
        batch_size=batch_size,
        inv_temp=float(1.0 / temperature),
        use_cosine=bool(use_cosine_similarity),
    )

    per_row = pl.pallas_call(
        kernel,
        out_shape=jax.ShapeDtypeStruct((n2, 1), jnp.float32),
        grid_spec=pltpu.PrefetchScalarGridSpec(
            num_scalar_prefetch=0,
            grid=(n_q, n_k),
            in_specs=[
                pl.BlockSpec((t, d_pad), lambda qi, ki: (qi, 0)),   # q rows
                pl.BlockSpec((t, d_pad), lambda qi, ki: (ki, 0)),   # k rows
            ],
            out_specs=pl.BlockSpec((t, 1), lambda qi, ki: (qi, 0)),
            scratch_shapes=[
                pltpu.VMEM((t, 1), jnp.float32),   # running max
                pltpu.VMEM((t, 1), jnp.float32),   # running denom
                pltpu.VMEM((t, 1), jnp.float32),   # positive logit
            ],
        ),
        compiler_params=pltpu.CompilerParams(
            dimension_semantics=("parallel", "arbitrary"),
            vmem_limit_bytes=48 * 1024 * 1024,
        ),
    )(reps, reps)

    return jnp.sum(per_row) / jnp.float32(n2)


def _ntxent_reference(zis, zjs, temperature, use_cosine):
    """Pure-JAX reference mirroring the PyTorch module."""
    n = zis.shape[0]
    r = jnp.concatenate([zjs, zis], axis=0).astype(jnp.float32)
    if use_cosine:
        rn = r / jnp.maximum(jnp.linalg.norm(r, axis=-1, keepdims=True), 1e-8)
    else:
        rn = r
    sim = rn @ rn.T / temperature
    n2 = 2 * n
    i = jnp.arange(n2)
    pos = sim[i, (i + n) % n2]
    masked = jnp.where(jnp.eye(n2, dtype=bool), -jnp.inf, sim)
    lse = jax.scipy.special.logsumexp(masked, axis=-1)
    return jnp.sum(lse - pos) / n2


if __name__ == "__main__":
    key = jax.random.PRNGKey(0)
    k1, k2, k3, k4 = jax.random.split(key, 4)
    temperature = 0.5

    # Case 1: small, single-tile, cosine similarity.
    zis = jax.random.normal(k1, (4, 32), dtype=jnp.float32)
    zjs = jax.random.normal(k2, (4, 32), dtype=jnp.float32)
    loss = jax.block_until_ready(
        ntxent_loss(zis, zjs, temperature=temperature,
                    use_cosine_similarity=True))
    ref = _ntxent_reference(zis, zjs, temperature, True)
    assert jnp.allclose(loss, ref, atol=1e-3, rtol=1e-4), (loss, ref)

    # Case 2: tiled path (grid 2x2, online logsumexp across k tiles).
    zis2 = jax.random.normal(k3, (8, 32), dtype=jnp.float32)
    zjs2 = jax.random.normal(k4, (8, 32), dtype=jnp.float32)
    loss2 = jax.block_until_ready(
        ntxent_loss(zis2, zjs2, temperature=temperature,
                    use_cosine_similarity=True, max_row_tile=8))
    ref2 = _ntxent_reference(zis2, zjs2, temperature, True)
    assert jnp.allclose(loss2, ref2, atol=1e-3, rtol=1e-4), (loss2, ref2)

    # Case 3: dot-product similarity path.
    loss3 = jax.block_until_ready(
        ntxent_loss(zis, zjs, temperature=temperature,
                    use_cosine_similarity=False))
    ref3 = _ntxent_reference(zis, zjs, temperature, False)
    assert jnp.allclose(loss3, ref3, atol=1e-3, rtol=1e-4), (loss3, ref3)

    print("KERNEL_OK")
</pallas_src>

<mosaic_0001>
module attributes {stable_mosaic.version = 11 : i64} {
  func.func @_ntxent_kernel(%arg0: i32, %arg1: i32, %arg2: memref<8x128xf32, #tpu.memory_space<vmem>>, %arg3: memref<8x128xf32, #tpu.memory_space<vmem>>, %arg4: memref<8x1xf32, #tpu.memory_space<vmem>>, %arg5: memref<8x1xf32, #tpu.memory_space<vmem>>, %arg6: memref<8x1xf32, #tpu.memory_space<vmem>>, %arg7: memref<8x1xf32, #tpu.memory_space<vmem>>) attributes {dimension_semantics = [#tpu.dimension_semantics<parallel>, #tpu.dimension_semantics<arbitrary>], iteration_bounds = array<i64: 1, 1>, scalar_prefetch = 0 : i64, scratch_operands = 3 : i64, tpu.core_type = #tpu.core_type<tc>, window_params = [{transform_indices = @transform_0, window_bounds = array<i64: 8, 128>}, {transform_indices = @transform_1, window_bounds = array<i64: 8, 128>}, {transform_indices = @transform_2, window_bounds = array<i64: 8, 1>}]} {
    %c0_i32 = arith.constant 0 : i32
    %0 = arith.cmpi eq, %arg1, %c0_i32 : i32
    %1 = arith.extui %0 : i1 to i32
    %c0_i32_0 = arith.constant 0 : i32
    %2 = arith.cmpi ne, %1, %c0_i32_0 : i32
    scf.if %2 {
      %cst_31 = arith.constant -1.000000e+30 : f32
      %71 = vector.broadcast %cst_31 : f32 to vector<8x1xf32>
      %c0_32 = arith.constant 0 : index
      %c0_33 = arith.constant 0 : index
      %72 = vector.load %arg5[%c0_32, %c0_33] : memref<8x1xf32, #tpu.memory_space<vmem>>, vector<8x1xf32>
      tpu.vector_store %arg5[%c0_32, %c0_33], %71 {strides = array<i32>} : memref<8x1xf32, #tpu.memory_space<vmem>>, vector<8x1xf32>,
      %cst_34 = arith.constant 0.000000e+00 : f32
      %73 = vector.broadcast %cst_34 : f32 to vector<8x1xf32>
      %c0_35 = arith.constant 0 : index
      %c0_36 = arith.constant 0 : index
      %74 = vector.load %arg6[%c0_35, %c0_36] : memref<8x1xf32, #tpu.memory_space<vmem>>, vector<8x1xf32>
      tpu.vector_store %arg6[%c0_35, %c0_36], %73 {strides = array<i32>} : memref<8x1xf32, #tpu.memory_space<vmem>>, vector<8x1xf32>,
      %cst_37 = arith.constant 0.000000e+00 : f32
      %75 = vector.broadcast %cst_37 : f32 to vector<8x1xf32>
      %c0_38 = arith.constant 0 : index
      %c0_39 = arith.constant 0 : index
      %76 = vector.load %arg7[%c0_38, %c0_39] : memref<8x1xf32, #tpu.memory_space<vmem>>, vector<8x1xf32>
      tpu.vector_store %arg7[%c0_38, %c0_39], %75 {strides = array<i32>} : memref<8x1xf32, #tpu.memory_space<vmem>>, vector<8x1xf32>,
    } else {
    }
    %c0 = arith.constant 0 : index
    %c0_1 = arith.constant 0 : index
    %3 = vector.load %arg2[%c0, %c0_1] : memref<8x128xf32, #tpu.memory_space<vmem>>, vector<8x128xf32>
    %c0_2 = arith.constant 0 : index
    %c0_3 = arith.constant 0 : index
    %4 = vector.load %arg3[%c0_2, %c0_3] : memref<8x128xf32, #tpu.memory_space<vmem>>, vector<8x128xf32>
    %5 = arith.mulf %4, %4 : vector<8x128xf32>
    %cst = arith.constant dense<0.000000e+00> : vector<8xf32>
    %6 = vector.multi_reduction <add>, %5, %cst [1] : vector<8x128xf32> to vector<8xf32>
    %7 = vector.shape_cast %6 : vector<8xf32> to vector<8x1xf32>
    %8 = math.sqrt %7 : vector<8x1xf32>
    %cst_4 = arith.constant 9.99999993E-9 : f32
    %9 = vector.broadcast %cst_4 : f32 to vector<8x1xf32>
    %10 = arith.maximumf %8, %9 : vector<8x1xf32>
    %cst_5 = arith.constant 1.000000e+00 : f32
    %11 = vector.broadcast %cst_5 : f32 to vector<8x1xf32>
    %12 = arith.divf %11, %10 : vector<8x1xf32>
    %13 = vector.broadcast %12 : vector<8x1xf32> to vector<8x128xf32>
    %14 = arith.mulf %4, %13 : vector<8x128xf32>
    %15 = arith.mulf %3, %3 : vector<8x128xf32>
    %cst_6 = arith.constant dense<0.000000e+00> : vector<8xf32>
    %16 = vector.multi_reduction <add>, %15, %cst_6 [1] : vector<8x128xf32> to vector<8xf32>
    %17 = vector.shape_cast %16 : vector<8xf32> to vector<8x1xf32>
    %18 = math.sqrt %17 : vector<8x1xf32>
    %cst_7 = arith.constant 9.99999993E-9 : f32
    %19 = vector.broadcast %cst_7 : f32 to vector<8x1xf32>
    %20 = arith.maximumf %18, %19 : vector<8x1xf32>
    %cst_8 = arith.constant 2.000000e+00 : f32
    %21 = vector.broadcast %cst_8 : f32 to vector<8x1xf32>
    %22 = arith.divf %21, %20 : vector<8x1xf32>
    %cst_9 = arith.constant dense<0.000000e+00> : vector<8x8xf32>
    %23 = tpu.matmul %3, %14, %cst_9 {dimension_numbers = #tpu.dot_dimension_numbers<[1], [1], [0], [0], [0, 0, 1, 0], [], []>} : vector<8x128xf32>, vector<8x128xf32>, vector<8x8xf32> -> vector<8x8xf32>
    %24 = vector.broadcast %22 : vector<8x1xf32> to vector<8x8xf32>
    %25 = arith.mulf %23, %24 : vector<8x8xf32>
    %26 = tpu.iota {dimensions = array<i32: 0>} : vector<8x8xi32>
    %27 = tpu.iota {dimensions = array<i32: 1>} : vector<8x8xi32>
    %c0_i32_10 = arith.constant 0 : i32
    %28 = arith.addi %arg0, %c0_i32_10 : i32
    %c1_i32 = arith.constant 1 : i32
    %c0_i32_11 = arith.constant 0 : i32
    %29 = arith.cmpi eq, %c1_i32, %c0_i32_11 : i32
    %c1_i32_12 = arith.constant 1 : i32
    %30 = arith.select %29, %c1_i32_12, %c1_i32 : i32
    %31 = arith.remsi %28, %30 : i32
    %c0_i32_13 = arith.constant 0 : i32
    %32 = arith.cmpi ne, %31, %c0_i32_13 : i32
    %c0_i32_14 = arith.constant 0 : i32
    %33 = arith.cmpi slt, %31, %c0_i32_14 : i32
    %c0_i32_15 = arith.constant 0 : i32
    %34 = arith.cmpi slt, %30, %c0_i32_15 : i32
    %35 = arith.xori %33, %34 : i1
    %36 = arith.andi %35, %32 : i1
    %37 = arith.addi %31, %30 : i32
    %38 = arith.select %36, %37, %31 : i32
    %39 = arith.cmpi eq, %arg1, %38 : i32
    %40 = arith.extui %39 : i1 to i32
    %c0_i32_16 = arith.constant 0 : i32
    %41 = arith.cmpi ne, %40, %c0_i32_16 : i32
    scf.if %41 {
      %c8_i32 = arith.constant 8 : i32
      %71 = arith.muli %arg0, %c8_i32 : i32
      %72 = vector.broadcast %71 : i32 to vector<8x8xi32>
      %73 = arith.addi %26, %72 : vector<8x8xi32>
      %c8_i32_31 = arith.constant 8 : i32
      %74 = arith.muli %arg1, %c8_i32_31 : i32
      %75 = vector.broadcast %74 : i32 to vector<8x8xi32>
      %76 = arith.addi %27, %75 : vector<8x8xi32>
      %c4_i32 = arith.constant 4 : i32
      %77 = vector.broadcast %c4_i32 : i32 to vector<8x8xi32>
      %78 = arith.addi %73, %77 : vector<8x8xi32>
      %c8_i32_32 = arith.constant 8 : i32
      %c0_i32_33 = arith.constant 0 : i32
      %79 = arith.cmpi eq, %c8_i32_32, %c0_i32_33 : i32
      %c1_i32_34 = arith.constant 1 : i32
      %80 = arith.select %79, %c1_i32_34, %c8_i32_32 : i32
      %81 = vector.broadcast %80 : i32 to vector<8x8xi32>
      %82 = arith.remsi %78, %81 : vector<8x8xi32>
      %c0_i32_35 = arith.constant 0 : i32
      %83 = vector.broadcast %c0_i32_35 : i32 to vector<8x8xi32>
      %84 = arith.cmpi ne, %82, %83 : vector<8x8xi32>
      %c0_i32_36 = arith.constant 0 : i32
      %85 = vector.broadcast %c0_i32_36 : i32 to vector<8x8xi32>
      %86 = arith.cmpi slt, %82, %85 : vector<8x8xi32>
      %c0_i32_37 = arith.constant 0 : i32
      %87 = arith.cmpi slt, %80, %c0_i32_37 : i32
      %88 = vector.broadcast %87 : i1 to vector<8x8xi1>
      %89 = vector.broadcast %88 : vector<8x8xi1> to vector<8x8xi1>
      %90 = arith.xori %86, %89 : vector<8x8xi1>
      %91 = arith.andi %90, %84 : vector<8x8xi1>
      %92 = vector.broadcast %80 : i32 to vector<8x8xi32>
      %93 = arith.addi %82, %92 : vector<8x8xi32>
      %94 = arith.select %91, %93, %82 : vector<8x8xi1>, vector<8x8xi32>
      %95 = arith.cmpi eq, %76, %94 : vector<8x8xi32>
      %c0_38 = arith.constant 0 : index
      %c0_39 = arith.constant 0 : index
      %96 = vector.load %arg7[%c0_38, %c0_39] : memref<8x1xf32, #tpu.memory_space<vmem>>, vector<8x1xf32>
      %cst_40 = arith.constant 0.000000e+00 : f32
      %97 = vector.broadcast %cst_40 : f32 to vector<8x8xf32>
      %98 = arith.select %95, %25, %97 : vector<8x8xi1>, vector<8x8xf32>
      %cst_41 = arith.constant dense<0.000000e+00> : vector<8xf32>
      %99 = vector.multi_reduction <add>, %98, %cst_41 [1] : vector<8x8xf32> to vector<8xf32>
      %100 = vector.shape_cast %99 : vector<8xf32> to vector<8x1xf32>
      %101 = arith.addf %96, %100 : vector<8x1xf32>
      %c0_42 = arith.constant 0 : index
      %c0_43 = arith.constant 0 : index
      %102 = vector.load %arg7[%c0_42, %c0_43] : memref<8x1xf32, #tpu.memory_space<vmem>>, vector<8x1xf32>
      tpu.vector_store %arg7[%c0_42, %c0_43], %101 {strides = array<i32>} : memref<8x1xf32, #tpu.memory_space<vmem>>, vector<8x1xf32>,
    } else {
    }
    %42 = arith.cmpi eq, %arg0, %arg1 : i32
    %43 = arith.extui %42 : i1 to i32
    %44 = arith.sitofp %43 : i32 to f32
    %45 = arith.cmpi eq, %26, %27 : vector<8x8xi32>
    %cst_17 = arith.constant -1.000000e+30 : f32
    %cst_18 = arith.constant 0.000000e+00 : f32
    %46 = vector.broadcast %cst_17 : f32 to vector<8x8xf32>
    %47 = vector.broadcast %cst_18 : f32 to vector<8x8xf32>
    %48 = arith.select %45, %46, %47 : vector<8x8xi1>, vector<8x8xf32>
    %49 = vector.broadcast %44 : f32 to vector<8x8xf32>
    %50 = arith.mulf %48, %49 : vector<8x8xf32>
    %51 = arith.addf %25, %50 : vector<8x8xf32>
    %c0_19 = arith.constant 0 : index
    %c0_20 = arith.constant 0 : index
    %52 = vector.load %arg5[%c0_19, %c0_20] : memref<8x1xf32, #tpu.memory_space<vmem>>, vector<8x1xf32>
    %cst_21 = arith.constant dense<0xFF800000> : vector<8xf32>
    %53 = vector.multi_reduction <maximumf>, %51, %cst_21 [1] : vector<8x8xf32> to vector<8xf32>
    %54 = vector.shape_cast %53 : vector<8xf32> to vector<8x1xf32>
    %55 = arith.maximumf %52, %54 : vector<8x1xf32>
    %56 = arith.subf %52, %55 : vector<8x1xf32>
    %57 = math.exp %56 : vector<8x1xf32>
    %c0_22 = arith.constant 0 : index
    %c0_23 = arith.constant 0 : index
    %58 = vector.load %arg6[%c0_22, %c0_23] : memref<8x1xf32, #tpu.memory_space<vmem>>, vector<8x1xf32>
    %59 = arith.mulf %57, %58 : vector<8x1xf32>
    %60 = vector.broadcast %55 : vector<8x1xf32> to vector<8x8xf32>
    %61 = arith.subf %51, %60 : vector<8x8xf32>
    %62 = math.exp %61 : vector<8x8xf32>
    %cst_24 = arith.constant dense<0.000000e+00> : vector<8xf32>
    %63 = vector.multi_reduction <add>, %62, %cst_24 [1] : vector<8x8xf32> to vector<8xf32>
    %64 = vector.shape_cast %63 : vector<8xf32> to vector<8x1xf32>
    %65 = arith.addf %59, %64 : vector<8x1xf32>
    %c0_25 = arith.constant 0 : index
    %c0_26 = arith.constant 0 : index
    %66 = vector.load %arg6[%c0_25, %c0_26] : memref<8x1xf32, #tpu.memory_space<vmem>>, vector<8x1xf32>
    tpu.vector_store %arg6[%c0_25, %c0_26], %65 {strides = array<i32>} : memref<8x1xf32, #tpu.memory_space<vmem>>, vector<8x1xf32>,
    %c0_27 = arith.constant 0 : index
    %c0_28 = arith.constant 0 : index
    %67 = vector.load %arg5[%c0_27, %c0_28] : memref<8x1xf32, #tpu.memory_space<vmem>>, vector<8x1xf32>
    tpu.vector_store %arg5[%c0_27, %c0_28], %55 {strides = array<i32>} : memref<8x1xf32, #tpu.memory_space<vmem>>, vector<8x1xf32>,
    %c0_i32_29 = arith.constant 0 : i32
    %68 = arith.cmpi eq, %arg1, %c0_i32_29 : i32
    %69 = arith.extui %68 : i1 to i32
    %c0_i32_30 = arith.constant 0 : i32
    %70 = arith.cmpi ne, %69, %c0_i32_30 : i32
    scf.if %70 {
      %c0_31 = arith.constant 0 : index
      %c0_32 = arith.constant 0 : index
      %71 = vector.load %arg5[%c0_31, %c0_32] : memref<8x1xf32, #tpu.memory_space<vmem>>, vector<8x1xf32>
      %c0_33 = arith.constant 0 : index
      %c0_34 = arith.constant 0 : index
      %72 = vector.load %arg6[%c0_33, %c0_34] : memref<8x1xf32, #tpu.memory_space<vmem>>, vector<8x1xf32>
      %73 = math.log %72 : vector<8x1xf32>
      %74 = arith.addf %71, %73 : vector<8x1xf32>
      %c0_35 = arith.constant 0 : index
      %c0_36 = arith.constant 0 : index
      %75 = vector.load %arg7[%c0_35, %c0_36] : memref<8x1xf32, #tpu.memory_space<vmem>>, vector<8x1xf32>
      %76 = arith.subf %74, %75 : vector<8x1xf32>
      %c0_37 = arith.constant 0 : index
      %c0_38 = arith.constant 0 : index
      %77 = vector.load %arg4[%c0_37, %c0_38] : memref<8x1xf32, #tpu.memory_space<vmem>>, vector<8x1xf32>
      tpu.vector_store %arg4[%c0_37, %c0_38], %76 {strides = array<i32>} : memref<8x1xf32, #tpu.memory_space<vmem>>, vector<8x1xf32>,
    } else {
    }
    return
  }
  func.func @transform_0(%arg0: i32, %arg1: i32) -> (i32, i32) {
    %c0_i32 = arith.constant 0 : i32
    %c0_i32_0 = arith.constant 0 : i32
    return %arg0, %c0_i32 : i32, i32
  }
  func.func @transform_1(%arg0: i32, %arg1: i32) -> (i32, i32) {
    %c0_i32 = arith.constant 0 : i32
    %c0_i32_0 = arith.constant 0 : i32
    return %arg1, %c0_i32 : i32, i32
  }
  func.func @transform_2(%arg0: i32, %arg1: i32) -> (i32, i32) {
    %c0_i32 = arith.constant 0 : i32
    %c0_i32_0 = arith.constant 0 : i32
    return %arg0, %c0_i32 : i32, i32
  }
}

</mosaic_0001>

<bundles_post_ra>
// kernel: tpu_custom_call.1
= control target key start
LH: loop header
LB: loop body
LE: loop exit
PB: predicated region body
PF: predicated region fallthrough
CT: control target
= control target key end

     0   :  { %7 = vsyncpa [#allocation6], 0  ;;  %s371_s0 = inlined_call_operand.hbm [shape: f32[8,128], index: 0, kind: input, shape index: {}]   ;;  %s372_s1 = inlined_call_operand.hbm [shape: f32[8,128], index: 1, kind: input, shape index: {}]   ;;  %s373_s2 = inlined_call_operand.vmem [shape: f32[8,1], index: 2, kind: output, shape index: {}]  }
   0x1   :  { %8 = vsyncpa [#allocation8], 0  ;;  %s307_s9 = smov [#allocation5]   ;;  %s308_s11 = smov [#allocation7]  }
   0x2   :  { %s15_s10 = sshll.u32 %s307_s9, 4  ;;  %s25_s12 = sshll.u32 %s308_s11, 4  ;;  %s16_s10 = int_to_ptr.vmem [resolvable:$true] %s15_s10  ;;  %s26_s12 = int_to_ptr.vmem [resolvable:$true] %s25_s12 }
   0x3   :  { %s259_s15 = scalar_lea.hbm %s371_s0, 128 }
   0x4   :  { %p260_p0 = scmp.ne.s32.totalorder %s371_s0, %s259_s15  ;;  %p263_p1 = scmp.lt.u32.totalorder %s259_s15, %s371_s0 }
   0x6   :  { %p265_p2 = pnand %p263_p1, %p260_p0 }
   0x8   :  { %268 = shalt.err (!%p265_p2)
}
   0x9   :  { %s269_s20 = scalar_lea.vmem %s16_s10, 128  ;;  %p274_p4 = scmp.lt.s32.totalorder %s16_s10, %s16_s10 }
   0xa   :  { %p270_p3 = scmp.ne.s32.totalorder %s16_s10, %s269_s20  ;;  %p275_p5 = scmp.lt.s32.totalorder %s269_s20, %s269_s20 }
   0xc   :  { %p276_p6 = por %p275_p5, %p274_p4 }
   0xe   :  { %p277_p7 = pnand %p276_p6, %p270_p3 }
  0x10   :  { %280 = shalt.err (!%p277_p7)
}
  0x11   :  { %18 = dma.hbm_to_vmem [thread:$0]  %s371_s0, 128, %s16_s10, [#allocation6]  }
  0x12   :  { %s281_s25 = scalar_lea.hbm %s372_s1, 128 }
  0x13   :  { %p282_p8 = scmp.ne.s32.totalorder %s372_s1, %s281_s25  ;;  %p285_p9 = scmp.lt.u32.totalorder %s281_s25, %s372_s1 }
  0x15   :  { %p287_p10 = pnand %p285_p9, %p282_p8 }
  0x17   :  { %290 = shalt.err (!%p287_p10)
}
  0x18   :  { %s291_s30 = scalar_lea.vmem %s26_s12, 128  ;;  %p296_p12 = scmp.lt.s32.totalorder %s26_s12, %s26_s12 }
  0x19   :  { %p292_p11 = scmp.ne.s32.totalorder %s26_s12, %s291_s30  ;;  %p297_p13 = scmp.lt.s32.totalorder %s291_s30, %s291_s30 }
  0x1b   :  { %p298_p0 = por %p297_p13, %p296_p12 }
  0x1d   :  { %p299_p1 = pnand %p298_p0, %p292_p11 }
  0x1f   :  { %302 = shalt.err (!%p299_p1)
}
  0x20   :  { %28 = dma.hbm_to_vmem [thread:$0]  %s372_s1, 128, %s26_s12, [#allocation8]  }
  0x21   :  { %303 = dma.done.wait [#allocation6], 128  }
  0x22   :  { %304 = vsyncadd [#allocation6], 4294967168 }
  0x23   :  { %305 = dma.done.wait [#allocation8], 128  }
  0x24   :  { %306 = vsyncadd [#allocation8], 4294967168  ;;  %v44_v0 = vld [vmem:[#allocation7] sm:$0xff]  ;;  %vm39_vm0 = vcmask 7168   ;;  %v309_v2 = vmov 0.0   ;;  %vm310_vm1 = vmmov 0   ;;  %v143_v14 = vlaneseq }
  0x25   :  { %v45_v1 = vmul.f32 %v44_v0, %v44_v0  ;;  %41 = vst.msk [vmem:[#allocation3] sm:$0xff] %vm39_vm0, %v309_v2  ;;  %42 = vst.msk [vmem:[#allocation4] sm:$0xff] %vm39_vm0, %v309_v2  ;;  %232 = vmatprep.subr.mxu0 %v309_v2  ;;  %234 = vmatprep.mubr.msk.f32.mxu0 %vm310_vm1, %v309_v2  ;;  %v43_v3 = vld [vmem:[#allocation5] sm:$0xff]  ;;  %v311_v20 = vmov -1e+30   ;;  %vm172_vm8 = vcmask 64512  }
  0x26   :  { %v59_v4 = vmul.f32 %v43_v3, %v43_v3  ;;  %v144_v15 = vshrl.u32 %v143_v14, 7  ;;  %v146_v17 = vand.u32 127, %v143_v14  ;;  %40 = vst.msk [vmem:[#allocation2] sm:$0xff] %vm39_vm0, %v311_v20  ;;  %v312_v37 = vmov 0  }
  0x27   :  { %46 = vadd.xlane.f32.xlu0 %v45_v1  ;;  %243 = vset.pattern.permute.xlu1 %v312_v37 }
  0x28   :  { %v156_v16 = vadd.s32 4, %v144_v15  ;;  %vm182_vm7 = vcmp.eq.s32.totalorder %v144_v15, %v146_v17  ;;  %244 = vset.pattern.permute.xlu0 %v312_v37 }
  0x29   :  { %v183_v31 = vsel %vm182_vm7, -1e+30, %v309_v2 }
  0x2a   :  { %v161_v18 = vand.u32 7, %v156_v16 }
  0x2b   :  { %60 = vadd.xlane.f32.xlu0 %v59_v4 }
  0x2c   :  { %vm354_vm4 = vcmp.eq.s32.totalorder %v146_v17, %v161_v18  ;;  %v196_v50 = vld [vmem:[#allocation3] sm:$0xff]  ;;  %v170_v54 = vld [vmem:[#allocation4] sm:$0xff] }
  0x2d   :  { %v187_v38 = vld [vmem:[#allocation2] sm:$0xff] }
  0xb4   :  { %v47_v5 = vpop.xlane.xlu0 %46 }
  0xb5   :  { %245 = vrsqrt.f32 %v47_v5  ;;  %vm50_vm2 = vcmp.eq.f32.partialorder %v47_v5, inf  ;;  %v53_v8 = vand.u32 2147483648, %v47_v5  ;;  %vm52_vm3 = vcmp.eq.f32.partialorder %v47_v5, 0.0 }
  0xb8   :  { %v61_v21 = vpop.xlane.xlu0 %60 }
  0xb9   :  { %vm64_vm5 = vcmp.eq.f32.partialorder %v61_v21, inf  ;;  %v67_v24 = vand.u32 2147483648, %v61_v21  ;;  %vm66_vm6 = vcmp.eq.f32.partialorder %v61_v21, 0.0 }
  0xbf   :  { %v246_v6 = vpop.eup %245 }
  0xc0   :  { %v49_v7 = vmul.f32 %v246_v6, %v47_v5 }
  0xc2   :  { %v51_v9 = vsel %vm50_vm2, %v47_v5, %v49_v7 }
  0xc3   :  { %v54_v10 = vsel %vm52_vm3, %v53_v8, %v51_v9 }
  0xc4   :  { %v55_v11 = vmax.f32 %v54_v10, 1e-08 }
  0xc6   :  { %247 = vrcp.f32 %v55_v11 }
  0xc7   :  { %249 = vrsqrt.f32 %v61_v21 }
  0xd0   :  { %v248_v12 = vpop.eup %247 }
  0xd1   :  { %v58_v13 = vmul.f32 %v248_v12, %v44_v0  ;;  %v250_v22 = vpop.eup %249 }
  0xd2   :  { %v63_v23 = vmul.f32 %v250_v22, %v61_v21 }
  0xd3   :  { %233 = vmatpush3.xpose.msra.mxu0 %v58_v13 }
  0xd4   :  { %v65_v25 = vsel %vm64_vm5, %v61_v21, %v63_v23 }
  0xd5   :  { %v68_v26 = vsel %vm66_vm6, %v67_v24, %v65_v25 }
  0xd6   :  { %235 = vmatmul.mubr.f32.vlgmr.msra.gmra.mrb[0].mxu0 %v43_v3  ;;  %v69_v27 = vmax.f32 %v68_v26, 1e-08 }
  0xd8   :  { %251 = vrcp.f32 %v69_v27 }
  0xe2   :  { %v252_v28 = vpop.eup %251 }
  0xe3   :  { %v71_v29 = vmul.f32 2.0, %v252_v28 }
 0x1a9   :  { %v138_v30 = vpop.f32.mrb[0].mxu0 }
 0x1aa   :  { %v142_v32 = vmul.f32 %v138_v30, %v71_v29  ;;  %v236_v33 = vpop.f32.mrb[1].mxu0 }
 0x1ac   :  { %v186_v34 = vadd.f32 %v183_v31, %v142_v32  ;;  %v171_v35 = vsel %vm354_vm4, %v142_v32, 0.0 }
 0x1ad   :  { %v173_v47 = vsel %vm172_vm8, %v171_v35, 0.0 }
 0x1ae   :  { %v189_v36 = vsel %vm172_vm8, %v186_v34, -inf }
 0x1af   :  { %190 = vmax.xlane.f32.xlu1 %v189_v36 }
 0x23c   :  { %v191_v39 = vpop.xlane.xlu1 %190 }
 0x23d   :  { %v192_v40 = vmax.f32 %v187_v38, %v191_v39 }
 0x23f   :  { %v193_v41 = vsub.f32 %v187_v38, %v192_v40  ;;  %212 = vst.msk [vmem:[#allocation2] sm:$0xff] %vm39_vm0, %v192_v40  ;;  %200 = vperm.xlu1 %243, %v192_v40  }
 0x241   :  { %v194_v48 = vmul.f32 1.442695, %v193_v41 }
 0x246   :  { %v216_v60 = vld [vmem:[#allocation2] sm:$0xff] }
 0x2be   :  { %v201_v42 = vpop.permute.xlu1 %200 }
 0x2bf   :  { %v203_v43 = vsub.f32 %v186_v34, %v201_v42 }
 0x2c1   :  { %v204_v44 = vmul.f32 1.442695, %v203_v43 }
 0x2c3   :  { %253 = vpow2.f32 %v204_v44 }
 0x2c4   :  { %255 = vpow2.f32 %v194_v48 }
 0x2cd   :  { %v254_v45 = vpop.eup %253 }
 0x2ce   :  { %v206_v46 = vsel %vm172_vm8, %v254_v45, 0.0  ;;  %v256_v49 = vpop.eup %255 }
 0x2cf   :  { %207 = vadd.xlane.f32.xlu0 %v206_v46  ;;  %v197_v51 = vmul.f32 %v256_v49, %v196_v50 }
 0x2d3   :  { %174 = vadd.xlane.f32.xlu0 %v173_v47 }
 0x35c   :  { %v208_v52 = vpop.xlane.xlu0 %207 }
 0x35d   :  { %v209_v53 = vadd.f32 %v208_v52, %v197_v51 }
 0x35f   :  { %211 = vst.msk [vmem:[#allocation3] sm:$0xff] %vm39_vm0, %v209_v53 }
 0x360   :  { %v175_v55 = vpop.xlane.xlu0 %174 }
 0x361   :  { %v176_v56 = vadd.f32 %v175_v55, %v170_v54 }
 0x363   :  { %178 = vst.msk [vmem:[#allocation4] sm:$0xff] %vm39_vm0, %v176_v56 }
 0x366   :  { %v217_v57 = vld [vmem:[#allocation3] sm:$0xff] }
 0x367   :  { %257 = vlog2.f32 %v217_v57 }
 0x36a   :  { %v221_v62 = vld [vmem:[#allocation4] sm:$0xff] }
 0x371   :  { %v258_v58 = vpop.eup %257 }
 0x372   :  { %v219_v59 = vmul.f32 0.6931472, %v258_v58 }
 0x374   :  { %v220_v61 = vadd.f32 %v219_v59, %v216_v60 }
 0x376   :  { %v222_v63 = vsub.f32 %v220_v61, %v221_v62 }
 0x378   :  { %223 = vst.msk [vmem:[%s373_s2] sm:$0xff] %vm39_vm0, %v222_v63 }
 0x379   :  { %228 = vsyncpa [#allocation6], 1 }
 0x37a   :  { %229 = vsyncpa [#allocation8], 1 }

</bundles_post_ra>
